<compile_context>
chip_gen: v5e
topology: v5e:2x2
jax: 0.10.0
libtpu: 0.0.40
codegen_flags: <defaults>
</compile_context>

<pallas_src>
import jax
import jax.numpy as jnp
from jax.experimental import pallas as pl
from jax.experimental.pallas import tpu as pltpu


# ---------------------------------------------------------------------------
# Kernels
# ---------------------------------------------------------------------------
def _matmul_kernel(x_ref, w_ref, o_ref):
    # x_ref: (tm, K) tokens, w_ref: (K, tn) weight, o_ref: (tm, tn)
    o_ref[...] = jnp.dot(
        x_ref[...], w_ref[...], preferred_element_type=jnp.float32
    ).astype(o_ref.dtype)


def _matmul_kernel_acc(x_ref, w_ref, o_ref, acc_ref):
    # Grid = (N_tiles, M_tiles, K_tiles); K innermost (reduction) axis.
    @pl.when(pl.program_id(2) == 0)
    def _init():
        acc_ref[...] = jnp.zeros_like(acc_ref)

    acc_ref[...] += jnp.dot(
        x_ref[...], w_ref[...], preferred_element_type=jnp.float32
    )

    @pl.when(pl.program_id(2) == pl.num_programs(2) - 1)
    def _store():
        o_ref[...] = acc_ref[...].astype(o_ref.dtype)


# ---------------------------------------------------------------------------
# Helpers
# ---------------------------------------------------------------------------
def _round_up(v: int, m: int) -> int:
    return ((v + m - 1) // m) * m


def _sublane_align(dtype) -> int:
    # 8 for f32, 16 for bf16, 32 for int8/fp8 (full packed sublanes).
    return max(8, 32 // max(1, jnp.dtype(dtype).itemsize))


def _divisor_tiles(dim: int, align: int, max_tile: int):
    """Multiples of `align` that divide `dim`, descending, capped at max_tile."""
    q = dim // align
    cap = max(max_tile, align)
    tiles = {d * align for d in range(1, q + 1) if q % d == 0 and d * align <= cap}
    tiles.add(align)
    return sorted(tiles, reverse=True)


def _pick_m_tile(M: int, want: int, align: int):
    """Tile for the (per-call, cheap-to-pad) M dimension."""
    Mp = _round_up(max(M, 1), align)
    want = min(_round_up(max(want, align), align), Mp)
    mt = pl.cdiv(Mp, want)
    tm = _round_up(pl.cdiv(Mp, mt), align)
    return tm, mt, tm * mt


def _vmem_cap_bytes() -> int:
    """~80% of physical VMEM per TensorCore; conservative fallback = v7x."""
    phys = None
    try:
        phys = pltpu.get_tpu_info().vmem_capacity_bytes
    except Exception:
        phys = None
    if not phys:
        phys = 64 << 20
    return int(min(phys * 0.8, 100 << 20))


# ---------------------------------------------------------------------------
# Public API
# ---------------------------------------------------------------------------
def prepare_weight(weight: jax.Array, dtype=None) -> jax.Array:
    """PyTorch nn.Linear weight [out, in] -> [in, out], optional cast
    (bf16 recommended on v6e/v7x), padded to multiples of 128 on both dims.
    Call ONCE at model-load time."""
    w_t = jnp.asarray(weight).T
    if dtype is not None:
        w_t = w_t.astype(dtype)
    K, N = w_t.shape
    Kp, Np = _round_up(K, 128), _round_up(N, 128)
    if (Kp, Np) != (K, N):
        w_t = jnp.pad(w_t, ((0, Kp - K), (0, Np - N)))
    return w_t
    # TODO(synk): optional fp8 weight storage on v7x for a further ~2x on the
    # dominant weight read (quality permitting).


def idefics3_simple_mlp(
    x: jax.Array,
    w_t: jax.Array,
    *,
    out_features: int | None = None,
    block_m: int | None = None,
    block_n: int | None = None,
    block_k: int | None = None,
    vmem_budget_bytes: int | None = None,
) -> jax.Array:
    """forward(x) = x @ W.T (bias-free projection).

    x:            [..., input_size]
    w_t:          [K_pad, N_pad] from prepare_weight()
    out_features: original output_size (needed only if it isn't 128-aligned)
    block_*:      optional tile overrides (block_k < K forces the 3-D path)
    """
    *lead, K = x.shape
    K_w, N_w = w_t.shape

    # Fallback per-call pad if caller skipped prepare_weight (avoid in prod).
    if K_w % 128 or N_w % 128:
        Kp_, Np_ = _round_up(K_w, 128), _round_up(N_w, 128)
        w_t = jnp.pad(w_t, ((0, Kp_ - K_w), (0, Np_ - N_w)))
    K_pad, N_pad = w_t.shape
    assert K <= K_pad and K_pad - K < 128, "weight inner dim does not match x"

    N = out_features if out_features is not None else N_w
    out_dtype = x.dtype

    # Feed the MXU matching dtypes: a narrower (bf16) weight pulls x down too.
    compute_dtype = x.dtype
    if (jnp.issubdtype(w_t.dtype, jnp.floating)
            and jnp.dtype(w_t.dtype).itemsize < jnp.dtype(x.dtype).itemsize):
        compute_dtype = w_t.dtype

    x2 = x.reshape(-1, K).astype(compute_dtype)
    M = x2.shape[0]

    xb = jnp.dtype(compute_dtype).itemsize
    wb = jnp.dtype(w_t.dtype).itemsize
    ob = jnp.dtype(out_dtype).itemsize
    m_align = _sublane_align(compute_dtype)

    budget = vmem_budget_bytes if vmem_budget_bytes is not None else _vmem_cap_bytes()
    M_res = _round_up(max(M, 1), m_align)

    plan = None

    # ---- Plan C forced: explicit K tiling requested -------------------------
    if block_k is not None and block_k < K_pad:
        tk = _divisor_tiles(K_pad, 128, block_k)[0]
        tn = _divisor_tiles(N_pad, 128, block_n or 256)[0]
        tm, mt, Mg = _pick_m_tile(M, block_m or 256, m_align)
        plan = dict(kind="3d", tm=tm, tn=tn, tk=tk, mt=mt,
                    nt=N_pad // tn, kt=K_pad // tk, Mg=Mg)

    # ---- Plan A: x fully resident, 1-D grid over N (both operands read once)
    if plan is None and (block_m is None or block_m >= M):
        x_foot = 2 * M_res * K_pad * xb            # conservatively double-buffered
        if x_foot * 2 <= budget:
            for tn in _divisor_tiles(N_pad, 128, block_n or 1024):
                # keep >=2 N tiles so both v7x TensorCores get work
                if tn == N_pad and N_pad > 128 and block_n is None:
                    continue
                foot = x_foot + 2 * K_pad * tn * wb + 2 * M_res * tn * ob
                if foot <= budget:
                    plan = dict(kind="resident", tm=M_res, tn=tn,
                                nt=N_pad // tn, Mg=M_res)
                    break

    # ---- Plan B: 2-D grid, full K per step ----------------------------------
    if plan is None:
        x_bytes = M_res * K_pad * xb
        w_bytes = K_pad * N_pad * wb
        weight_outer = w_bytes >= x_bytes          # read the bigger operand once
        tn_cands = _divisor_tiles(N_pad, 128, block_n or (1024 if weight_outer else 512))
        tm_cands = [block_m] if block_m else [512, 256, 128, 64, 32, 16, 8]
        found = None
        if weight_outer:
            # maximise tn first: cuts the x re-read factor (N_pad / tn)
            for tn in tn_cands:
                for tm_want in tm_cands:
                    tm, mt, Mg = _pick_m_tile(M, max(tm_want, m_align), m_align)
                    foot = 2 * (tm * K_pad * xb + K_pad * tn * wb) + 2 * tm * tn * ob
                    if foot <= budget:
                        found = (tm, tn, mt, Mg)
                        break
                if found:
                    break
        else:
            # maximise tm first: cuts the weight re-read factor
            for tm_want in tm_cands:
                tm, mt, Mg = _pick_m_tile(M, max(tm_want, m_align), m_align)
                for tn in tn_cands:
                    foot = 2 * (tm * K_pad * xb + K_pad * tn * wb) + 2 * tm * tn * ob
                    if foot <= budget:
                        found = (tm, tn, mt, Mg)
                        break
                if found:
                    break
        if found:
            tm, tn, mt, Mg = found
            plan = dict(kind="2d", tm=tm, tn=tn, mt=mt, nt=N_pad // tn,
                        Mg=Mg, weight_outer=weight_outer)

    # ---- Plan C fallback: 3-D grid with K reduction --------------------------
    if plan is None:
        found = None
        for tk in _divisor_tiles(K_pad, 128, block_k or 2048):
            for tn in _divisor_tiles(N_pad, 128, block_n or 256):
                for tm_want in ([block_m] if block_m else [256, 128, 64, 32, 16, 8]):
                    tm, mt, Mg = _pick_m_tile(M, max(tm_want, m_align), m_align)
                    foot = (2 * (tm * tk * xb + tk * tn * wb)
                            + 2 * tm * tn * ob + tm * tn * 4)
                    if foot <= budget:
                        found = (tm, tn, tk, mt, Mg)
                        break
                if found:
                    break
            if found:
                break
        if not found:      # last resort: minimal tiles
            tm, mt, Mg = _pick_m_tile(M, m_align, m_align)
            found = (tm, 128, 128, mt, Mg)
        tm, tn, tk, mt, Mg = found
        plan = dict(kind="3d", tm=tm, tn=tn, tk=tk, mt=mt,
                    nt=N_pad // tn, kt=K_pad // tk, Mg=Mg)

    # ---- Pad activations (cheap, per-call) -----------------------------------
    Mg = plan["Mg"]
    if Mg != M or K_pad != K:
        x2 = jnp.pad(x2, ((0, Mg - M), (0, K_pad - K)))

    kind = plan["kind"]
    tm, tn = plan["tm"], plan["tn"]

    if kind == "resident":
        nt = plan["nt"]
        grid = (nt,)
        in_specs = [
            pl.BlockSpec((Mg, K_pad), lambda j: (0, 0)),    # whole x, fetched once
            pl.BlockSpec((K_pad, tn), lambda j: (0, j)),    # weight streamed once
        ]
        out_specs = pl.BlockSpec((Mg, tn), lambda j: (0, j))
        scratch = []
        kernel = _matmul_kernel
        dims = ("parallel",)
        x_reads, w_reads = 1, 1
        needed = 2 * Mg * K_pad * xb + 2 * K_pad * tn * wb + 2 * Mg * tn * ob
    elif kind == "2d":
        mt, nt = plan["mt"], plan["nt"]
        if plan["weight_outer"]:
            grid = (nt, mt)                                  # M innermost
            in_specs = [
                pl.BlockSpec((tm, K_pad), lambda j, i: (i, 0)),
                pl.BlockSpec((K_pad, tn), lambda j, i: (0, j)),
            ]
            out_specs = pl.BlockSpec((tm, tn), lambda j, i: (i, j))
            x_reads, w_reads = nt, 1
        else:
            grid = (mt, nt)                                  # N innermost
            in_specs = [
                pl.BlockSpec((tm, K_pad), lambda i, j: (i, 0)),
                pl.BlockSpec((K_pad, tn), lambda i, j: (0, j)),
            ]
            out_specs = pl.BlockSpec((tm, tn), lambda i, j: (i, j))
            x_reads, w_reads = 1, mt
        scratch = []
        kernel = _matmul_kernel
        dims = ("parallel", "parallel")
        needed = 2 * (tm * K_pad * xb + K_pad * tn * wb) + 2 * tm * tn * ob
    else:  # "3d"
        mt, nt, kt, tk = plan["mt"], plan["nt"], plan["kt"], plan["tk"]
        grid = (nt, mt, kt)
        in_specs = [
            pl.BlockSpec((tm, tk), lambda j, i, k: (i, k)),
            pl.BlockSpec((tk, tn), lambda j, i, k: (k, j)),
        ]
        out_specs = pl.BlockSpec((tm, tn), lambda j, i, k: (i, j))
        scratch = [pltpu.VMEM((tm, tn), jnp.float32)]
        kernel = _matmul_kernel_acc
        dims = ("parallel", "parallel", "arbitrary")
        x_reads, w_reads = nt, mt
        needed = 2 * (tm * tk * xb + tk * tn * wb) + 2 * tm * tn * ob + tm * tn * 4

    cost = pl.CostEstimate(
        flops=2 * M * K_pad * N_pad,
        bytes_accessed=(x_reads * Mg * K_pad * xb
                        + w_reads * K_pad * N_pad * wb
                        + Mg * N_pad * ob),
        transcendentals=0,
    )

    # Generation-aware scoped-VMEM budget with headroom for Mosaic internals.
    cap = _vmem_cap_bytes()
    vmem_limit = int(max(32 << 20, 1.3 * needed + (2 << 20)))
    vmem_limit = min(vmem_limit, max(cap, int(needed) + (2 << 20)))

    out = pl.pallas_call(
        kernel,
        out_shape=jax.ShapeDtypeStruct((Mg, N_pad), out_dtype),
        grid_spec=pltpu.PrefetchScalarGridSpec(
            num_scalar_prefetch=0,
            grid=grid,
            in_specs=in_specs,
            out_specs=out_specs,
            scratch_shapes=scratch,
        ),
        compiler_params=pltpu.CompilerParams(
            dimension_semantics=dims,
            vmem_limit_bytes=vmem_limit,
        ),
        cost_estimate=cost,
    )(x2, w_t)

    return out[:M, :N].reshape(*lead, N)


# ---------------------------------------------------------------------------
# Self-test
# ---------------------------------------------------------------------------
if __name__ == "__main__":
    key = jax.random.PRNGKey(0)
    k1, k2, k3, k4, k5, k6 = jax.random.split(key, 6)

    # --- Test 1: toy Idefics3 config, f32, auto plan (resident-x, 1-D grid) --
    #   vision hidden = 32, scale_factor = 2 -> input_size = 128
    #   text hidden   = 64                   -> output_size = 64 (padded to 128)
    vision_hidden, scale_factor = 32, 2
    input_size = vision_hidden * scale_factor**2           # 128
    output_size = 64
    batch, seq = 2, 8

    x = jax.random.normal(k1, (batch, seq, input_size), dtype=jnp.float32)
    weight = jax.random.normal(k2, (output_size, input_size), dtype=jnp.float32) * 0.02

    w_t = prepare_weight(weight)                            # [128, 128], once
    out = idefics3_simple_mlp(x, w_t, out_features=output_size)
    jax.block_until_ready(out)

    ref = jnp.einsum("bsk,nk->bsn", x, weight)
    assert out.shape == (batch, seq, output_size)
    assert jnp.allclose(out, ref, atol=2e-3, rtol=2e-3), "mismatch (resident path)"

    # --- Test 2: bf16 weight, forced 2-D full-K path (block_m < M) -----------
    M2, K2, N2 = 50, 512, 384
    x2 = jax.random.normal(k3, (M2, K2), dtype=jnp.float32)
    w2 = jax.random.normal(k4, (N2, K2), dtype=jnp.float32) * 0.02
    w2_t = prepare_weight(w2, dtype=jnp.bfloat16)

    out2 = idefics3_simple_mlp(x2, w2_t, out_features=N2, block_m=32, block_n=128)
    jax.block_until_ready(out2)

    x2_bf = x2.astype(jnp.bfloat16).astype(jnp.float32)
    w2_bf = w2.astype(jnp.bfloat16).astype(jnp.float32)
    ref2 = x2_bf @ w2_bf.T
    assert out2.shape == (M2, N2)
    assert jnp.allclose(out2, ref2, atol=2e-2, rtol=2e-2), "mismatch (2D path)"

    # --- Test 3: forced 3-D accumulator path (block_k < K) -------------------
    M3, K3, N3 = 50, 512, 256
    x3 = jax.random.normal(k5, (M3, K3), dtype=jnp.float32)
    w3 = jax.random.normal(k6, (N3, K3), dtype=jnp.float32) * 0.02
    w3_t = prepare_weight(w3)

    out3 = idefics3_simple_mlp(x3, w3_t, block_k=128)       # kt = 4
    jax.block_until_ready(out3)

    ref3 = x3 @ w3.T
    assert out3.shape == (M3, N3)
    assert jnp.allclose(out3, ref3, atol=1e-2, rtol=1e-2), "mismatch (3D path)"

    print("KERNEL_OK")
</pallas_src>

<mosaic_0001>
module attributes {stable_mosaic.version = 11 : i64} {
  func.func @_matmul_kernel(%arg0: i32, %arg1: memref<16x128xf32, #tpu.memory_space<vmem>>, %arg2: memref<128x128xf32, #tpu.memory_space<vmem>>, %arg3: memref<16x128xf32, #tpu.memory_space<vmem>>) attributes {dimension_semantics = [#tpu.dimension_semantics<parallel>], iteration_bounds = array<i64: 1>, scalar_prefetch = 0 : i64, scratch_operands = 0 : i64, tpu.core_type = #tpu.core_type<tc>, window_params = [{pipeline_mode = #tpu.pipeline_mode<synchronous>, transform_indices = @transform_0, window_bounds = array<i64: 16, 128>}, {transform_indices = @transform_1, window_bounds = array<i64: 128, 128>}, {transform_indices = @transform_2, window_bounds = array<i64: 16, 128>}]} {
    %c0 = arith.constant 0 : index
    %c0_0 = arith.constant 0 : index
    %0 = vector.load %arg1[%c0, %c0_0] : memref<16x128xf32, #tpu.memory_space<vmem>>, vector<16x128xf32>
    %c0_1 = arith.constant 0 : index
    %c0_2 = arith.constant 0 : index
    %1 = vector.load %arg2[%c0_1, %c0_2] : memref<128x128xf32, #tpu.memory_space<vmem>>, vector<128x128xf32>
    %cst = arith.constant dense<0.000000e+00> : vector<16x128xf32>
    %2 = tpu.matmul %0, %1, %cst {dimension_numbers = #tpu.dot_dimension_numbers<[1], [0], [0], [1], [0, 0, 1, 1], [], []>} : vector<16x128xf32>, vector<128x128xf32>, vector<16x128xf32> -> vector<16x128xf32>
    %c0_3 = arith.constant 0 : index
    %c0_4 = arith.constant 0 : index
    %3 = vector.load %arg3[%c0_3, %c0_4] : memref<16x128xf32, #tpu.memory_space<vmem>>, vector<16x128xf32>
    tpu.vector_store %arg3[%c0_3, %c0_4], %2 {strides = array<i32>} : memref<16x128xf32, #tpu.memory_space<vmem>>, vector<16x128xf32>,
    return
  }
  func.func @transform_0(%arg0: i32) -> (i32, i32) {
    %c0_i32 = arith.constant 0 : i32
    %c0_i32_0 = arith.constant 0 : i32
    %c0_i32_1 = arith.constant 0 : i32
    return %c0_i32, %c0_i32_0 : i32, i32
  }
  func.func @transform_1(%arg0: i32) -> (i32, i32) {
    %c0_i32 = arith.constant 0 : i32
    %c0_i32_0 = arith.constant 0 : i32
    return %c0_i32, %arg0 : i32, i32
  }
  func.func @transform_2(%arg0: i32) -> (i32, i32) {
    %c0_i32 = arith.constant 0 : i32
    %c0_i32_0 = arith.constant 0 : i32
    return %c0_i32, %arg0 : i32, i32
  }
}

</mosaic_0001>

<bundles_post_ra>
// kernel: tpu_custom_call.1
= control target key start
LH: loop header
LB: loop body
LE: loop exit
PB: predicated region body
PF: predicated region fallthrough
CT: control target
= control target key end

     0   :  { %7 = vsyncpa [#allocation3], 0  ;;  %s244_s0 = inlined_call_operand.hbm [shape: f32[16,128], index: 0, kind: input, shape index: {}]   ;;  %s245_s1 = inlined_call_operand.hbm [shape: f32[128,128], index: 1, kind: input, shape index: {}]   ;;  %s246_s2 = inlined_call_operand.hbm [shape: f32[16,128], index: 2, kind: output, shape index: {}]  }
   0x1   :  { %8 = vsyncpa [#allocation6], 0 }
   0x2   :  { %9 = vsyncpa [#allocation4], 0  ;;  %s14_s11 = sshll.u32 %s244_s0, 4  ;;  %s206_s12 = smov [#allocation2]   ;;  %s15_s11 = int_to_ptr.hbm [resolvable:$true] %s14_s11 }
   0x3   :  { %s16_s13 = sshll.u32 %s206_s12, 4  ;;  %s27_s16 = sshll.u32 %s245_s1, 4  ;;  %s17_s13 = int_to_ptr.vmem [resolvable:$true] %s16_s13  ;;  %s28_s16 = int_to_ptr.hbm [resolvable:$true] %s27_s16 }
   0x4   :  { %s207_s17 = smov 128   ;;  %s208_s18 = smov 8  }
   0x5   :  { %22 = dma.hbm_to_vmem [thread:$0]  %s15_s11, 256, %s17_s13, [#allocation3], %s207_s17, %s207_s17, %s208_s18  }
   0x6   :  { %s209_s19 = smov [#allocation5]  }
   0x7   :  { %s29_s20 = sshll.u32 %s209_s19, 4  ;;  %s30_s20 = int_to_ptr.vmem [resolvable:$true] %s29_s20 }
   0x8   :  { %35 = dma.hbm_to_vmem [thread:$0]  %s28_s16, 2048, %s30_s20, [#allocation6], %s207_s17, %s207_s17, %s208_s18  }
   0x9   :  { %200 = dma.done.wait [#allocation3], 256  }
   0xa   :  { %201 = vsyncadd [#allocation3], 4294967040 }
   0xb   :  { %202 = dma.done.wait [#allocation6], 2048  }
   0xc   :  { %203 = vsyncadd [#allocation6], 4294965248  ;;  %v61_v0 = vld [vmem:[#allocation5 + $0x78] sm:$0xff]  ;;  %v60_v1 = vld [vmem:[#allocation5 + $0x70] sm:$0xff]  ;;  %s210_s0 = smov [#allocation7]   ;;  %s93_s23 = sshll.u32 %s246_s2, 4  ;;  %s94_s23 = int_to_ptr.hbm [resolvable:$true] %s93_s23 }
   0xd   :  { %62 = vmatpush.msra.mxu0 %v61_v0  ;;  %107 = vmatpush.msra.mxu1 %v61_v0  ;;  %v59_v2 = vld [vmem:[#allocation5 + $0x68] sm:$0xff]  ;;  %v58_v3 = vld [vmem:[#allocation5 + $0x60] sm:$0xff]  ;;  %v57_v4 = vld [vmem:[#allocation5 + $0x58] sm:$0xff]  ;;  %s91_s1 = sshll.u32 %s210_s0, 4  ;;  %s92_s1 = int_to_ptr.vmem [resolvable:$true] %s91_s1 }
   0xe   :  { %v56_v5 = vld [vmem:[#allocation5 + $0x50] sm:$0xff]  ;;  %v55_v6 = vld [vmem:[#allocation5 + $0x48] sm:$0xff]  ;;  %v54_v7 = vld [vmem:[#allocation5 + $0x40] sm:$0xff] }
   0xf   :  { %63 = vmatpush.msra.mxu0 %v60_v1  ;;  %108 = vmatpush.msra.mxu1 %v60_v1  ;;  %v53_v8 = vld [vmem:[#allocation5 + $0x38] sm:$0xff]  ;;  %v52_v9 = vld [vmem:[#allocation5 + $0x30] sm:$0xff]  ;;  %v51_v10 = vld [vmem:[#allocation5 + $0x28] sm:$0xff] }
  0x10   :  { %v50_v11 = vld [vmem:[#allocation5 + $0x20] sm:$0xff]  ;;  %v49_v12 = vld [vmem:[#allocation5 + $0x18] sm:$0xff]  ;;  %v48_v13 = vld [vmem:[#allocation5 + $0x10] sm:$0xff] }
  0x11   :  { %64 = vmatpush.msra.mxu0 %v59_v2  ;;  %109 = vmatpush.msra.mxu1 %v59_v2  ;;  %v47_v14 = vld [vmem:[#allocation5 + $0x8] sm:$0xff]  ;;  %v46_v15 = vld [vmem:[#allocation5] sm:$0xff]  ;;  %v44_v16 = vld [vmem:[#allocation2] sm:$0xff] }
  0x12   :  { %v45_v17 = vld [vmem:[#allocation2 + $0x8] sm:$0xff] }
  0x13   :  { %65 = vmatpush.msra.mxu0 %v58_v3  ;;  %110 = vmatpush.msra.mxu1 %v58_v3 }
  0x15   :  { %66 = vmatpush.msra.mxu0 %v57_v4  ;;  %111 = vmatpush.msra.mxu1 %v57_v4 }
  0x17   :  { %67 = vmatpush.msra.mxu0 %v56_v5  ;;  %112 = vmatpush.msra.mxu1 %v56_v5 }
  0x19   :  { %68 = vmatpush.msra.mxu0 %v55_v6  ;;  %113 = vmatpush.msra.mxu1 %v55_v6 }
  0x1b   :  { %69 = vmatpush.msra.mxu0 %v54_v7  ;;  %114 = vmatpush.msra.mxu1 %v54_v7 }
  0x1d   :  { %70 = vmatpush.msra.mxu0 %v53_v8  ;;  %115 = vmatpush.msra.mxu1 %v53_v8 }
  0x1f   :  { %71 = vmatpush.msra.mxu0 %v52_v9  ;;  %116 = vmatpush.msra.mxu1 %v52_v9 }
  0x21   :  { %72 = vmatpush.msra.mxu0 %v51_v10  ;;  %117 = vmatpush.msra.mxu1 %v51_v10 }
  0x23   :  { %73 = vmatpush.msra.mxu0 %v50_v11  ;;  %118 = vmatpush.msra.mxu1 %v50_v11 }
  0x25   :  { %74 = vmatpush.msra.mxu0 %v49_v12  ;;  %119 = vmatpush.msra.mxu1 %v49_v12 }
  0x27   :  { %75 = vmatpush.msra.mxu0 %v48_v13  ;;  %120 = vmatpush.msra.mxu1 %v48_v13 }
  0x29   :  { %76 = vmatpush.msra.mxu0 %v47_v14  ;;  %121 = vmatpush.msra.mxu1 %v47_v14 }
  0x2b   :  { %77 = vmatpush.msra.mxu0 %v46_v15  ;;  %122 = vmatpush.msra.mxu1 %v46_v15 }
  0x2c   :  { %78 = vmatmul.f32.vlgmr.msra.gmra.mxu0 %v44_v16  ;;  %81 = vmatmul.f32.vlgmr.msra.gmra.mxu1 %v45_v17 }
  0xa9   :  { %v79_v18 = vpop.f32.mrf.mxu0  ;;  %v82_v19 = vpop.f32.mrf.mxu1 }
  0xaa   :  { %85 = vst [vmem:[#allocation7] sm:$0xff] %v79_v18 }
  0xab   :  { %86 = vst [vmem:[#allocation7 + $0x8] sm:$0xff] %v82_v19 }
  0xac   :  { %99 = dma.vmem_to_hbm [thread:$0]  %s92_s1, 256, %s94_s23, [#allocation4], %s207_s17, %s207_s17, %s208_s18  }
  0xad   :  { %204 = dma.done.wait [#allocation4], 256  }
  0xae   :  { %205 = vsyncadd [#allocation4], 4294967040 }
  0xaf   :  { %104 = vsyncpa [#allocation3], 1 }
  0xb0   :  { %105 = vsyncpa [#allocation6], 1 }
  0xb1   :  { %106 = vsyncpa [#allocation4], 1 }

</bundles_post_ra>
